<compile_context>
chip_gen: v7x
topology: tpu7x:2x2x1
jax: 0.10.0
libtpu: 0.0.40
codegen_flags: <defaults>
</compile_context>

<pallas_src>
import jax
import jax.numpy as jnp
from jax.experimental import pallas as pl
from jax.experimental.pallas import tpu as pltpu

LANES = 128
SUBLANES = 8
DEFAULT_TILE_ROWS = 2048  # 2048 x 128 f32 = 1 MiB per input block
NUM_PARALLEL = 2          # v7x has 2 TensorCores; harmless elsewhere


def _round_up(x, m):
    return (x + m - 1) // m * m


def _pick_tile_rows(rows):
    return max(SUBLANES, min(DEFAULT_TILE_ROWS, _round_up(rows, SUBLANES)))


def _flatten_body_tail(x):
    """Row-major flatten into a (rows, 128) body + optional <128-elem tail.
    No full-tensor pad/copy: the aligned body is a free reshape, only the tiny
    tail (if any) is sliced off and handled in the wrapper."""
    n = int(x.size)
    flat = x.reshape(-1)
    n_body = (n // LANES) * LANES
    if n_body == n:
        return flat.reshape(-1, LANES), None
    return flat[:n_body].reshape(-1, LANES), flat[n_body:]


def _make_unweighted_kernel(tile_rows, rows, tiles_per_core, full_tiles, needs_mask):
    def _reduce(x):  # (tile_rows, 128) -> (8, 128), pure VPU add chain
        return x.reshape(tile_rows // SUBLANES, SUBLANES, LANES).sum(axis=0)

    def kernel(p_ref, t_ref, out_ref, acc_ref):
        p = pl.program_id(0)
        t = pl.program_id(1)
        lt = p * tiles_per_core + t  # linear tile index

        @pl.when(t == 0)
        def _():
            acc_ref[...] = jnp.zeros_like(acc_ref)

        d = jnp.abs(p_ref[...].astype(jnp.float32) - t_ref[...].astype(jnp.float32))

        if needs_mask:
            @pl.when(lt < full_tiles)
            def _():
                acc_ref[...] += _reduce(d)

            @pl.when(lt >= full_tiles)
            def _():
                rid = jax.lax.broadcasted_iota(jnp.int32, d.shape, 0)
                valid = rows - lt * tile_rows  # <= 0 for empty tiles
                acc_ref[...] += _reduce(jnp.where(rid < valid, d, 0.0))
        else:
            acc_ref[...] += _reduce(d)

        @pl.when(t == tiles_per_core - 1)
        def _():
            out_ref[...] = acc_ref[...]

    return kernel


def _make_weighted_kernel(tile_rows, rows, tiles_per_core, full_tiles, needs_mask):
    def _reduce(x):
        return x.reshape(tile_rows // SUBLANES, SUBLANES, LANES).sum(axis=0)

    def kernel(p_ref, t_ref, w_ref, od_ref, owd_ref, ow_ref,
               acc_d, acc_wd, acc_w):
        p = pl.program_id(0)
        t = pl.program_id(1)
        lt = p * tiles_per_core + t

        @pl.when(t == 0)
        def _():
            acc_d[...] = jnp.zeros_like(acc_d)
            acc_wd[...] = jnp.zeros_like(acc_wd)
            acc_w[...] = jnp.zeros_like(acc_w)

        diff = p_ref[...].astype(jnp.float32) - t_ref[...].astype(jnp.float32)
        w = w_ref[...].astype(jnp.float32)
        d = jnp.abs(diff)
        wd = jnp.abs(diff * w)

        if needs_mask:
            @pl.when(lt < full_tiles)
            def _():
                acc_d[...] += _reduce(d)
                acc_wd[...] += _reduce(wd)
                acc_w[...] += _reduce(w)

            @pl.when(lt >= full_tiles)
            def _():
                rid = jax.lax.broadcasted_iota(jnp.int32, d.shape, 0)
                keep = rid < (rows - lt * tile_rows)
                acc_d[...] += _reduce(jnp.where(keep, d, 0.0))
                acc_wd[...] += _reduce(jnp.where(keep, wd, 0.0))
                acc_w[...] += _reduce(jnp.where(keep, w, 0.0))
        else:
            acc_d[...] += _reduce(d)
            acc_wd[...] += _reduce(wd)
            acc_w[...] += _reduce(w)

        @pl.when(t == tiles_per_core - 1)
        def _():
            od_ref[...] = acc_d[...]
            owd_ref[...] = acc_wd[...]
            ow_ref[...] = acc_w[...]

    return kernel


def _l1_loss_small(pred, target, weight, loss_weight):
    """Pure-jnp path for inputs with fewer than 128 elements."""
    p = pred.astype(jnp.float32).reshape(-1)
    t = target.astype(jnp.float32).reshape(-1)
    base = float(loss_weight) * jnp.mean(jnp.abs(p - t))
    if weight is None:
        return base
    w = weight.astype(jnp.float32).reshape(-1)
    sw = jnp.sum(w)
    weighted = float(loss_weight) * jnp.sum(jnp.abs((p - t) * w)) / sw
    return jnp.where(sw < 0.001, base, weighted)


def l1_loss_pallas(pred, target, weight=None, loss_weight=1.0, tile_rows=None):
    """Pallas implementation of basicsr L1Loss.forward (reduction='mean')."""
    assert pred.shape == target.shape
    n = int(pred.size)
    if n < LANES:
        return _l1_loss_small(pred, target, weight, loss_weight)

    p2d, p_tail = _flatten_body_tail(pred)
    t2d, t_tail = _flatten_body_tail(target)
    rows = p2d.shape[0]

    if tile_rows is None:
        tile_rows = _pick_tile_rows(rows)
    assert tile_rows % SUBLANES == 0 and tile_rows > 0

    n_linear_tiles = pl.cdiv(rows, tile_rows)
    num_cores = min(NUM_PARALLEL, n_linear_tiles)
    tiles_per_core = pl.cdiv(n_linear_tiles, num_cores)
    full_tiles = rows // tile_rows
    overshoot = num_cores * tiles_per_core > n_linear_tiles
    needs_mask = (rows % tile_rows != 0) or overshoot

    if overshoot:
        # Clamp so we never ask for a block starting past the end of the array;
        # the fully-empty tile is masked to zero contribution in the kernel.
        def in_map(p, t):
            return (jnp.minimum(p * tiles_per_core + t, n_linear_tiles - 1), 0)
    else:
        def in_map(p, t):
            return (p * tiles_per_core + t, 0)

    in_spec = pl.BlockSpec((tile_rows, LANES), in_map)
    out_spec = pl.BlockSpec((SUBLANES, LANES), lambda p, t: (p, 0))
    out_sds = jax.ShapeDtypeStruct((num_cores * SUBLANES, LANES), jnp.float32)
    grid = (num_cores, tiles_per_core)
    bytes_per_elem = pred.dtype.itemsize
    compiler_params = pltpu.CompilerParams(
        dimension_semantics=("parallel", "arbitrary"))

    if weight is None:
        kernel = _make_unweighted_kernel(tile_rows, rows, tiles_per_core,
                                         full_tiles, needs_mask)
        partials = pl.pallas_call(
            kernel,
            out_shape=out_sds,
            grid_spec=pltpu.PrefetchScalarGridSpec(
                num_scalar_prefetch=0,
                grid=grid,
                in_specs=[in_spec, in_spec],
                out_specs=out_spec,
                scratch_shapes=[pltpu.VMEM((SUBLANES, LANES), jnp.float32)],
            ),
            compiler_params=compiler_params,
            cost_estimate=pl.CostEstimate(
                flops=3 * n, transcendentals=0,
                bytes_accessed=2 * n * bytes_per_elem),
        )(p2d, t2d)
        total = jnp.sum(partials)
        if p_tail is not None:
            total = total + jnp.sum(jnp.abs(p_tail.astype(jnp.float32)
                                            - t_tail.astype(jnp.float32)))
        return total * (float(loss_weight) / float(n))

    # Weighted path: sum(|d|), sum(|d*w|), sum(w) in one streaming pass; the
    # data-dependent `weight_sum < 0.001` fallback is resolved with jnp.where.
    assert weight.shape == pred.shape
    w2d, w_tail = _flatten_body_tail(weight)
    kernel = _make_weighted_kernel(tile_rows, rows, tiles_per_core,
                                   full_tiles, needs_mask)
    pd, pwd, pw = pl.pallas_call(
        kernel,
        out_shape=(out_sds, out_sds, out_sds),
        grid_spec=pltpu.PrefetchScalarGridSpec(
            num_scalar_prefetch=0,
            grid=grid,
            in_specs=[in_spec, in_spec, in_spec],
            out_specs=[out_spec, out_spec, out_spec],
            scratch_shapes=[pltpu.VMEM((SUBLANES, LANES), jnp.float32),
                            pltpu.VMEM((SUBLANES, LANES), jnp.float32),
                            pltpu.VMEM((SUBLANES, LANES), jnp.float32)],
        ),
        compiler_params=compiler_params,
        cost_estimate=pl.CostEstimate(
            flops=6 * n, transcendentals=0,
            bytes_accessed=3 * n * bytes_per_elem),
    )(p2d, t2d, w2d)
    sd = jnp.sum(pd)
    swd = jnp.sum(pwd)
    sw = jnp.sum(pw)
    if p_tail is not None:
        tp = p_tail.astype(jnp.float32)
        tt = t_tail.astype(jnp.float32)
        tw = w_tail.astype(jnp.float32)
        tdiff = tp - tt
        sd = sd + jnp.sum(jnp.abs(tdiff))
        swd = swd + jnp.sum(jnp.abs(tdiff * tw))
        sw = sw + jnp.sum(tw)
    mean_fallback = sd / float(n)
    return float(loss_weight) * jnp.where(sw < 0.001, mean_fallback, swd / sw)


def l1_loss_reference(pred, target, weight=None, loss_weight=1.0):
    """Pure-JAX reference mirroring the PyTorch module semantics."""
    pred = pred.astype(jnp.float32)
    target = target.astype(jnp.float32)
    base = loss_weight * jnp.mean(jnp.abs(pred - target))
    if weight is None:
        return base
    weight = weight.astype(jnp.float32)
    wsum = jnp.sum(weight)
    weighted = loss_weight * jnp.sum(jnp.abs((pred - target) * weight)) / wsum
    return jnp.where(wsum < 0.001, base, weighted)


if __name__ == "__main__":
    key = jax.random.PRNGKey(0)
    k1, k2, k3 = jax.random.split(key, 3)

    ok = True

    def check(name, got, ref, rtol=1e-5, atol=1e-6):
        global ok
        got = jax.block_until_ready(got)
        if not jnp.allclose(got, ref, rtol=rtol, atol=atol):
            ok = False
            print(f"MISMATCH {name}: got={got} ref={ref}")

    # Base case: (N, C, H, W) as the module documents.
    shape = (2, 4, 16, 16)
    pred = jax.random.normal(k1, shape, dtype=jnp.float32)
    target = jax.random.normal(k2, shape, dtype=jnp.float32)
    weight = jax.random.uniform(k3, shape, dtype=jnp.float32)
    for name, w in [("unweighted", None),
                    ("weighted", weight),
                    ("weighted_near_zero", jnp.zeros(shape, jnp.float32))]:
        check(name,
              l1_loss_pallas(pred, target, w, loss_weight=2.0),
              l1_loss_reference(pred, target, w, loss_weight=2.0))

    # Multi-tile + 2-way parallel split + per-core partial outputs.
    shape2 = (2, 4, 32, 32)
    p2 = jax.random.normal(k1, shape2, dtype=jnp.float32)
    t2 = jax.random.normal(k2, shape2, dtype=jnp.float32)
    w2 = jax.random.uniform(k3, shape2, dtype=jnp.float32)
    for name, w in [("unweighted", None), ("weighted", w2)]:
        check("split_" + name,
              l1_loss_pallas(p2, t2, w, loss_weight=2.0, tile_rows=8),
              l1_loss_reference(p2, t2, w, loss_weight=2.0))
    # Odd tile count: exercises the clamped index map / fully-masked empty tile.
    check("split_odd_tiles",
          l1_loss_pallas(p2, t2, None, loss_weight=2.0, tile_rows=24),
          l1_loss_reference(p2, t2, None, loss_weight=2.0))

    # Ragged shape: masked last tile + <128-element tail folded in the wrapper.
    rshape = (2, 3, 17, 19)  # 1938 = 15*128 + 18 elements
    rp = jax.random.normal(k1, rshape, dtype=jnp.float32)
    rt = jax.random.normal(k2, rshape, dtype=jnp.float32)
    rw = jax.random.uniform(k3, rshape, dtype=jnp.float32)
    for name, w in [("unweighted", None), ("weighted", rw)]:
        check("ragged_" + name,
              l1_loss_pallas(rp, rt, w, loss_weight=1.5, tile_rows=8),
              l1_loss_reference(rp, rt, w, loss_weight=1.5))

    if ok:
        print("KERNEL_OK")
</pallas_src>

<mosaic_0001>
module attributes {stable_mosaic.version = 11 : i64} {
  func.func @kernel(%arg0: i32, %arg1: i32, %arg2: memref<16x128xf32, #tpu.memory_space<vmem>>, %arg3: memref<16x128xf32, #tpu.memory_space<vmem>>, %arg4: memref<8x128xf32, #tpu.memory_space<vmem>>, %arg5: memref<8x128xf32, #tpu.memory_space<vmem>>) attributes {dimension_semantics = [#tpu.dimension_semantics<parallel>, #tpu.dimension_semantics<arbitrary>], iteration_bounds = array<i64: 1, 1>, scalar_prefetch = 0 : i64, scratch_operands = 1 : i64, tpu.core_type = #tpu.core_type<tc>, window_params = [{transform_indices = @transform_0, window_bounds = array<i64: 16, 128>}, {transform_indices = @transform_1, window_bounds = array<i64: 16, 128>}, {transform_indices = @transform_2, window_bounds = array<i64: 8, 128>}]} {
    %c0_i32 = arith.constant 0 : i32
    %0 = arith.cmpi eq, %arg1, %c0_i32 : i32
    %1 = arith.extui %0 : i1 to i32
    %c0_i32_0 = arith.constant 0 : i32
    %2 = arith.cmpi ne, %1, %c0_i32_0 : i32
    scf.if %2 {
      %cst_10 = arith.constant 0.000000e+00 : f32
      %15 = vector.broadcast %cst_10 : f32 to vector<8x128xf32>
      %c0_11 = arith.constant 0 : index
      %c0_12 = arith.constant 0 : index
      %16 = vector.load %arg5[%c0_11, %c0_12] : memref<8x128xf32, #tpu.memory_space<vmem>>, vector<8x128xf32>
      tpu.vector_store %arg5[%c0_11, %c0_12], %15 {strides = array<i32>} : memref<8x128xf32, #tpu.memory_space<vmem>>, vector<8x128xf32>,
    } else {
    }
    %c0 = arith.constant 0 : index
    %c0_1 = arith.constant 0 : index
    %3 = vector.load %arg2[%c0, %c0_1] : memref<16x128xf32, #tpu.memory_space<vmem>>, vector<16x128xf32>
    %c0_2 = arith.constant 0 : index
    %c0_3 = arith.constant 0 : index
    %4 = vector.load %arg3[%c0_2, %c0_3] : memref<16x128xf32, #tpu.memory_space<vmem>>, vector<16x128xf32>
    %5 = arith.subf %3, %4 : vector<16x128xf32>
    %6 = math.absf %5 : vector<16x128xf32>
    %c0_4 = arith.constant 0 : index
    %c0_5 = arith.constant 0 : index
    %7 = vector.load %arg5[%c0_4, %c0_5] : memref<8x128xf32, #tpu.memory_space<vmem>>, vector<8x128xf32>
    %8 = vector.shape_cast %6 : vector<16x128xf32> to vector<2x8x128xf32>
    %cst = arith.constant dense<0.000000e+00> : vector<8x128xf32>
    %9 = vector.multi_reduction <add>, %8, %cst [0] : vector<2x8x128xf32> to vector<8x128xf32>
    %10 = arith.addf %7, %9 : vector<8x128xf32>
    %c0_6 = arith.constant 0 : index
    %c0_7 = arith.constant 0 : index
    %11 = vector.load %arg5[%c0_6, %c0_7] : memref<8x128xf32, #tpu.memory_space<vmem>>, vector<8x128xf32>
    tpu.vector_store %arg5[%c0_6, %c0_7], %10 {strides = array<i32>} : memref<8x128xf32, #tpu.memory_space<vmem>>, vector<8x128xf32>,
    %c0_i32_8 = arith.constant 0 : i32
    %12 = arith.cmpi eq, %arg1, %c0_i32_8 : i32
    %13 = arith.extui %12 : i1 to i32
    %c0_i32_9 = arith.constant 0 : i32
    %14 = arith.cmpi ne, %13, %c0_i32_9 : i32
    scf.if %14 {
      %c0_10 = arith.constant 0 : index
      %c0_11 = arith.constant 0 : index
      %15 = vector.load %arg5[%c0_10, %c0_11] : memref<8x128xf32, #tpu.memory_space<vmem>>, vector<8x128xf32>
      %c0_12 = arith.constant 0 : index
      %c0_13 = arith.constant 0 : index
      %16 = vector.load %arg4[%c0_12, %c0_13] : memref<8x128xf32, #tpu.memory_space<vmem>>, vector<8x128xf32>
      tpu.vector_store %arg4[%c0_12, %c0_13], %15 {strides = array<i32>} : memref<8x128xf32, #tpu.memory_space<vmem>>, vector<8x128xf32>,
    } else {
    }
    return
  }
  func.func @transform_0(%arg0: i32, %arg1: i32) -> (i32, i32) {
    %c1_i32 = arith.constant 1 : i32
    %0 = arith.muli %arg0, %c1_i32 : i32
    %1 = arith.addi %0, %arg1 : i32
    %c0_i32 = arith.constant 0 : i32
    %c0_i32_0 = arith.constant 0 : i32
    return %1, %c0_i32 : i32, i32
  }
  func.func @transform_1(%arg0: i32, %arg1: i32) -> (i32, i32) {
    %c1_i32 = arith.constant 1 : i32
    %0 = arith.muli %arg0, %c1_i32 : i32
    %1 = arith.addi %0, %arg1 : i32
    %c0_i32 = arith.constant 0 : i32
    %c0_i32_0 = arith.constant 0 : i32
    return %1, %c0_i32 : i32, i32
  }
  func.func @transform_2(%arg0: i32, %arg1: i32) -> (i32, i32) {
    %c0_i32 = arith.constant 0 : i32
    %c0_i32_0 = arith.constant 0 : i32
    return %arg0, %c0_i32 : i32, i32
  }
}

</mosaic_0001>

<bundles_post_ra>
// kernel: tpu_custom_call.1
= control target key start
LH: loop header
LB: loop body
LE: loop exit
PB: predicated region body
PF: predicated region fallthrough
CT: control target
= control target key end

     0   :  { %7 = vsyncpa [#allocation4], 0  ;;  %s223_s0 = inlined_call_operand.hbm [shape: f32[16,128], index: 0, kind: input, shape index: {}]   ;;  %s224_s1 = inlined_call_operand.hbm [shape: f32[16,128], index: 1, kind: input, shape index: {}]   ;;  %s225_s2 = inlined_call_operand.hbm [shape: f32[8,128], index: 2, kind: output, shape index: {}]  }
   0x1   :  { %8 = vsyncpa [#allocation7], 0 }
   0x2   :  { %9 = vsyncpa [#allocation5], 0  ;;  %s167_s9 = smov [#allocation3]   ;;  %s95_s13 = scalar_lea.hbm %s223_s0, 256 }
   0x3   :  { %s19_s10 = sshll.u32 %s167_s9, 4  ;;  %p96_p0 = scmp.ne.s32.totalorder %s223_s0, %s95_s13  ;;  %s20_s10 = int_to_ptr.vmem [resolvable:$true] %s19_s10 }
   0x4   :  { %p99_p1 = scmp.lt.u32.totalorder %s95_s13, %s223_s0 }
   0x6   :  { %p101_p2 = pnand %p99_p1, %p96_p0 }
   0x8   :  { %104 = shalt.err (!%p101_p2)
}
   0x9   :  { %s105_s18 = scalar_lea.vmem %s20_s10, 256  ;;  %p110_p4 = scmp.lt.s32.totalorder %s20_s10, %s20_s10 }
   0xa   :  { %p106_p3 = scmp.ne.s32.totalorder %s20_s10, %s105_s18  ;;  %p111_p5 = scmp.lt.s32.totalorder %s105_s18, %s105_s18 }
   0xc   :  { %p112_p6 = por %p111_p5, %p110_p4 }
   0xe   :  { %p113_p7 = pnand %p112_p6, %p106_p3 }
  0x10   :  { %116 = shalt.err (!%p113_p7)
}
  0x11   :  { %s168_s19 = smov 128   ;;  %s169_s20 = smov 8  }
  0x12   :  { %25 = dma.hbm_to_vmem [thread:$0]  %s223_s0, 256, %s20_s10, [#allocation4], %s168_s19, %s168_s19, %s169_s20  }
  0x13   :  { %s170_s23 = smov [#allocation6]   ;;  %s117_s27 = scalar_lea.hbm %s224_s1, 256 }
  0x14   :  { %s35_s24 = sshll.u32 %s170_s23, 4  ;;  %p118_p8 = scmp.ne.s32.totalorder %s224_s1, %s117_s27  ;;  %s36_s24 = int_to_ptr.vmem [resolvable:$true] %s35_s24 }
  0x15   :  { %p121_p9 = scmp.lt.u32.totalorder %s117_s27, %s224_s1 }
  0x17   :  { %p123_p10 = pnand %p121_p9, %p118_p8 }
  0x19   :  { %126 = shalt.err (!%p123_p10)
}
  0x1a   :  { %s127_s4 = scalar_lea.vmem %s36_s24, 256  ;;  %p132_p12 = scmp.lt.s32.totalorder %s36_s24, %s36_s24 }
  0x1b   :  { %p128_p11 = scmp.ne.s32.totalorder %s36_s24, %s127_s4  ;;  %p133_p13 = scmp.lt.s32.totalorder %s127_s4, %s127_s4 }
  0x1d   :  { %p134_p0 = por %p133_p13, %p132_p12 }
  0x1f   :  { %p135_p1 = pnand %p134_p0, %p128_p11 }
  0x21   :  { %138 = shalt.err (!%p135_p1)
}
  0x22   :  { %41 = dma.hbm_to_vmem [thread:$0]  %s224_s1, 256, %s36_s24, [#allocation7], %s168_s19, %s168_s19, %s169_s20  }
  0x23   :  { %161 = dma.done.wait [#allocation4], 256  }
  0x24   :  { %162 = vsyncadd [#allocation4], 4294967040 }
  0x25   :  { %163 = dma.done.wait [#allocation7], 256  }
  0x26   :  { %164 = vsyncadd [#allocation7], 4294967040  ;;  %v57_v0 = vld [vmem:[#allocation3] sm:$0xff]  ;;  %v58_v1 = vld [vmem:[#allocation3 + $0x8] sm:$0xff]  ;;  %s171_s6 = smov [#allocation8]  }
  0x27   :  { %v59_v2 = vld [vmem:[#allocation6] sm:$0xff]  ;;  %v60_v3 = vld [vmem:[#allocation6 + $0x8] sm:$0xff]  ;;  %s80_s7 = sshll.u32 %s171_s6, 4  ;;  %s81_s7 = int_to_ptr.vmem [resolvable:$true] %s80_s7 }
  0x28   :  { %v61_v4 = vsub.f32 %v57_v0, %v59_v2  ;;  %v62_v5 = vsub.f32 %v58_v1, %v60_v3  ;;  %s139_s8 = scalar_lea.vmem %s81_s7, 128  ;;  %p144_p3 = scmp.lt.s32.totalorder %s81_s7, %s81_s7 }
  0x29   :  { %p140_p2 = scmp.ne.s32.totalorder %s81_s7, %s139_s8  ;;  %p145_p4 = scmp.lt.s32.totalorder %s139_s8, %s139_s8 }
  0x2a   :  { %v63_v6 = vand.u32 2147483647, %v61_v4  ;;  %v64_v7 = vand.u32 2147483647, %v62_v5 }
  0x2b   :  { %p146_p5 = por %p145_p4, %p144_p3 }
  0x2c   :  { %v66_v8 = vadd.f32 %v64_v7, %v63_v6 }
  0x2d   :  { %p147_p6 = pnand %p146_p5, %p140_p2 }
  0x2e   :  { %73 = vst [vmem:[#allocation8] sm:$0xff] %v66_v8 }
  0x2f   :  { %150 = shalt.err (!%p147_p6)
}
  0x30   :  { %s151_s10 = scalar_lea.hbm %s225_s2, 128 }
  0x31   :  { %p152_p7 = scmp.ne.s32.totalorder %s225_s2, %s151_s10  ;;  %p155_p8 = scmp.lt.u32.totalorder %s151_s10, %s225_s2 }
  0x33   :  { %p157_p9 = pnand %p155_p8, %p152_p7 }
  0x35   :  { %160 = shalt.err (!%p157_p9)
}
  0x36   :  { %83 = dma.vmem_to_hbm [thread:$0]  %s81_s7, 128, %s225_s2, [#allocation5]  }
  0x37   :  { %165 = dma.done.wait [#allocation5], 128  }
  0x38   :  { %166 = vsyncadd [#allocation5], 4294967168 }
  0x39   :  { %87 = vsyncpa [#allocation4], 1 }
  0x3a   :  { %88 = vsyncpa [#allocation7], 1 }
  0x3b   :  { %89 = vsyncpa [#allocation5], 1 }

</bundles_post_ra>
